<compile_context>
chip_gen: v5e
topology: v5e:2x2
jax: 0.10.0
libtpu: 0.0.40
codegen_flags: <defaults>
</compile_context>

<pallas_src>
import functools

import jax
import jax.numpy as jnp
from jax.experimental import pallas as pl
from jax.experimental.pallas import tpu as pltpu


def _make_mlp_kernel(layer_shapes):
    """Fused MLP body. layer_shapes = ((fo, fi), ...) in torch order."""
    num_linears = len(layer_shapes)
    hp = jax.lax.Precision.HIGHEST

    def kernel(x_ref, *refs):
        # refs = (w0, b0, w1, b1, ..., w_{L-1}, b_{L-1}, o_ref)
        o_ref = refs[-1]
        param_refs = refs[:-1]

        a = None
        for i, (fo, fi) in enumerate(layer_shapes):
            w = param_refs[2 * i][...]
            b = param_refs[2 * i + 1][...]           # [fo, 1] -> broadcasts on lanes
            if i == 0:
                # x tile is [block_n, d_in] (batch on sublanes).  Contract the
                # shared minor dim on the MXU: 'md,nd->mn'.  This folds the
                # [N,d_in] -> [d_in,N] transpose into the matmul itself.
                z = jax.lax.dot_general(
                    w, x_ref[...],
                    dimension_numbers=(((1,), (1,)), ((), ())),
                    preferred_element_type=jnp.float32,
                    precision=hp) + b                # [fo, block_n]
            elif fo == 1:
                # Tiny output row-count: weight arrives pre-laid-out as [fi, 1].
                # Broadcast-multiply (VPU) + sublane reduce (XLU) instead of a
                # 1/256-utilized MXU pass.
                z = jnp.sum(w * a, axis=0, keepdims=True) + b   # [1, block_n]
            else:
                # Hidden 64x64 matmul, batch on lanes: z = W @ a.
                z = jax.lax.dot_general(
                    w, a,
                    dimension_numbers=(((1,), (0,)), ((), ())),
                    preferred_element_type=jnp.float32,
                    precision=hp) + b                # [fo, block_n]
            if i < num_linears - 1:
                a = jnp.tanh(z)                      # EUP; exact (1e-4 tolerance)
            else:
                a = z                                # last layer: no activation
        o_ref[...] = a.astype(o_ref.dtype)

    return kernel


def _round_up(v, m):
    return ((v + m - 1) // m) * m


def transnet_forward(x, weights, biases, *, block_n=None):
    """Fused MLP forward.

    x: [N, d_in] f32; weights[i]: [layers[i+1], layers[i]] (torch layout);
    biases[i]: [layers[i+1]].  Returns [N, d_out] f32.
    """
    n, d_in = x.shape
    num_linears = len(weights)
    # The module's forward only matches a plain chain of linears for >= 2 layers.
    assert num_linears >= 2, "Net forward semantics require at least 2 linear layers"
    assert weights[0].shape[1] == d_in
    d_out = weights[-1].shape[0]

    if block_n is None:
        if n < 256:
            block_n = n                               # single (full-dim) block
        else:
            # >= 2 grid iterations so both v7x TensorCores get work; cap the
            # block so v5e/v6e still get fat (but register/VMEM-sane) blocks.
            block_n = min(_round_up((n + 1) // 2, 128), 2048)
    grid = (pl.cdiv(n, block_n),)

    # x stays [N, d_in]; the kernel consumes [block_n, d_in] tiles directly.
    in_specs = [pl.BlockSpec((block_n, d_in), lambda i: (i, 0))]

    # Parameters (~17 KiB total): untiled, fully VMEM-resident — no per-step
    # pipelining bookkeeping for these tiny constant streams.
    vmem_spec = pl.BlockSpec(memory_space=pltpu.MemorySpace.VMEM)
    flat_params = []
    layer_shapes = []
    for idx, (w, b) in enumerate(zip(weights, biases)):
        fo, fi = w.shape
        layer_shapes.append((fo, fi))
        if idx > 0 and fo == 1:
            # Pre-layout once (free bitcast [1, fi] -> [fi, 1]) for the
            # VPU+XLU reduction path in the kernel.
            w_in = w.reshape(fi, 1)
        else:
            w_in = w
        flat_params.append(w_in)
        flat_params.append(b.reshape(fo, 1))
        in_specs.append(vmem_spec)
        in_specs.append(vmem_spec)

    out_spec = pl.BlockSpec((d_out, block_n), lambda i: (0, i))

    flops = int(2 * sum(int(w.size) for w in weights) * n)
    transcendentals = int(sum(int(w.shape[0]) for w in weights[:-1]) * n)  # tanh count
    bytes_accessed = int(4 * (n * (d_in + d_out)
                              + sum(int(w.size) + int(w.shape[0]) for w in weights)))

    out_t = pl.pallas_call(
        _make_mlp_kernel(tuple(layer_shapes)),
        out_shape=jax.ShapeDtypeStruct((d_out, n), jnp.float32),
        grid_spec=pltpu.PrefetchScalarGridSpec(
            num_scalar_prefetch=0,
            grid=grid,
            in_specs=in_specs,
            out_specs=out_spec,
        ),
        compiler_params=pltpu.CompilerParams(
            dimension_semantics=("parallel",),
        ),
        cost_estimate=pl.CostEstimate(
            flops=flops,
            transcendentals=transcendentals,
            bytes_accessed=bytes_accessed,
        ),
    )(x, *flat_params)

    if d_out == 1:
        # [1, N] -> [N, 1] is a free bitcast (no XLA transpose op).
        return out_t.reshape(n, d_out)
    return out_t.T


def init_params(layers, key):
    """Xavier-normal weights (gain=1.0), zero biases — matches nn.init in the module.

    Weights are kept in torch-native [out_features, in_features] layout.
    """
    weights, biases = [], []
    for i in range(len(layers) - 1):
        fan_in, fan_out = layers[i], layers[i + 1]
        key, sub = jax.random.split(key)
        std = jnp.sqrt(2.0 / (fan_in + fan_out))          # xavier_normal_, gain=1.0
        w = std * jax.random.normal(sub, (fan_out, fan_in), dtype=jnp.float32)
        b = jnp.zeros((fan_out,), dtype=jnp.float32)
        weights.append(w)
        biases.append(b)
    return weights, biases


def reference_forward(x, weights, biases):
    """Pure-JAX reference mirroring the PyTorch forward exactly (torch layout)."""
    hp = jax.lax.Precision.HIGHEST
    a = jnp.tanh(jnp.dot(x, weights[0].T, precision=hp) + biases[0])
    for i in range(1, len(weights) - 1):
        a = jnp.tanh(jnp.dot(a, weights[i].T, precision=hp) + biases[i])
    return jnp.dot(a, weights[-1].T, precision=hp) + biases[-1]


if __name__ == "__main__":
    # TransNet for Allen-Cahn 2D: input (x, t) -> hidden -> hidden -> scalar u.
    layers = [2, 64, 64, 1]
    batch = 256                                            # -> grid=(2,) on all gens

    key = jax.random.PRNGKey(0)
    key, kx = jax.random.split(key)
    x = jax.random.uniform(kx, (batch, layers[0]), dtype=jnp.float32,
                           minval=-1.0, maxval=1.0)

    weights, biases = init_params(layers, key)

    fwd = jax.jit(functools.partial(transnet_forward))
    out = fwd(x, weights, biases)
    out = jax.block_until_ready(out)

    ref = reference_forward(x, weights, biases)
    assert out.shape == (batch, layers[-1]), out.shape
    assert jnp.allclose(out, ref, atol=1e-4, rtol=1e-4), \
        float(jnp.max(jnp.abs(out - ref)))

    print("KERNEL_OK")
</pallas_src>

<mosaic_0001>
module attributes {stable_mosaic.version = 11 : i64} {
  func.func @kernel(%arg0: i32, %arg1: memref<128x2xf32, #tpu.memory_space<vmem>>, %arg2: memref<64x2xf32, #tpu.memory_space<vmem>>, %arg3: memref<64x1xf32, #tpu.memory_space<vmem>>, %arg4: memref<64x64xf32, #tpu.memory_space<vmem>>, %arg5: memref<64x1xf32, #tpu.memory_space<vmem>>, %arg6: memref<64x1xf32, #tpu.memory_space<vmem>>, %arg7: memref<1x1xf32, #tpu.memory_space<vmem>>, %arg8: memref<1x128xf32, #tpu.memory_space<vmem>>) attributes {dimension_semantics = [#tpu.dimension_semantics<parallel>], iteration_bounds = array<i64: 2>, scalar_prefetch = 0 : i64, scratch_operands = 0 : i64, tpu.core_type = #tpu.core_type<tc>, window_params = [{transform_indices = @transform_0, window_bounds = array<i64: 128, 2>}, {pipeline_mode = #tpu.pipeline_mode<synchronous>, transform_indices = @transform_1, window_bounds = array<i64: 64, 2>}, {pipeline_mode = #tpu.pipeline_mode<synchronous>, transform_indices = @transform_2, window_bounds = array<i64: 64, 1>}, {pipeline_mode = #tpu.pipeline_mode<synchronous>, transform_indices = @transform_3, window_bounds = array<i64: 64, 64>}, {pipeline_mode = #tpu.pipeline_mode<synchronous>, transform_indices = @transform_4, window_bounds = array<i64: 64, 1>}, {pipeline_mode = #tpu.pipeline_mode<synchronous>, transform_indices = @transform_5, window_bounds = array<i64: 64, 1>}, {pipeline_mode = #tpu.pipeline_mode<synchronous>, transform_indices = @transform_6, window_bounds = array<i64: 1, 1>}, {transform_indices = @transform_7, window_bounds = array<i64: 1, 128>}]} {
    %c0 = arith.constant 0 : index
    %c0_0 = arith.constant 0 : index
    %0 = vector.load %arg2[%c0, %c0_0] : memref<64x2xf32, #tpu.memory_space<vmem>>, vector<64x2xf32>
    %c0_1 = arith.constant 0 : index
    %c0_2 = arith.constant 0 : index
    %1 = vector.load %arg3[%c0_1, %c0_2] : memref<64x1xf32, #tpu.memory_space<vmem>>, vector<64x1xf32>
    %c0_3 = arith.constant 0 : index
    %c0_4 = arith.constant 0 : index
    %2 = vector.load %arg1[%c0_3, %c0_4] : memref<128x2xf32, #tpu.memory_space<vmem>>, vector<128x2xf32>
    %cst = arith.constant dense<0.000000e+00> : vector<64x128xf32>
    %3 = tpu.matmul %0, %2, %cst {dimension_numbers = #tpu.dot_dimension_numbers<[1], [1], [0], [0], [0, 0, 1, 0], [], []>, precision = #tpu.contract_precision<fp32>} : vector<64x2xf32>, vector<128x2xf32>, vector<64x128xf32> -> vector<64x128xf32>
    %4 = vector.broadcast %1 : vector<64x1xf32> to vector<64x128xf32>
    %5 = arith.addf %3, %4 : vector<64x128xf32>
    %6 = math.tanh %5 : vector<64x128xf32>
    %c0_5 = arith.constant 0 : index
    %c0_6 = arith.constant 0 : index
    %7 = vector.load %arg4[%c0_5, %c0_6] : memref<64x64xf32, #tpu.memory_space<vmem>>, vector<64x64xf32>
    %c0_7 = arith.constant 0 : index
    %c0_8 = arith.constant 0 : index
    %8 = vector.load %arg5[%c0_7, %c0_8] : memref<64x1xf32, #tpu.memory_space<vmem>>, vector<64x1xf32>
    %cst_9 = arith.constant dense<0.000000e+00> : vector<64x128xf32>
    %9 = tpu.matmul %7, %6, %cst_9 {dimension_numbers = #tpu.dot_dimension_numbers<[1], [0], [0], [1], [0, 0, 1, 1], [], []>, precision = #tpu.contract_precision<fp32>} : vector<64x64xf32>, vector<64x128xf32>, vector<64x128xf32> -> vector<64x128xf32>
    %10 = vector.broadcast %8 : vector<64x1xf32> to vector<64x128xf32>
    %11 = arith.addf %9, %10 : vector<64x128xf32>
    %12 = math.tanh %11 : vector<64x128xf32>
    %c0_10 = arith.constant 0 : index
    %c0_11 = arith.constant 0 : index
    %13 = vector.load %arg6[%c0_10, %c0_11] : memref<64x1xf32, #tpu.memory_space<vmem>>, vector<64x1xf32>
    %c0_12 = arith.constant 0 : index
    %c0_13 = arith.constant 0 : index
    %14 = vector.load %arg7[%c0_12, %c0_13] : memref<1x1xf32, #tpu.memory_space<vmem>>, vector<1x1xf32>
    %15 = vector.broadcast %13 : vector<64x1xf32> to vector<64x128xf32>
    %16 = arith.mulf %15, %12 : vector<64x128xf32>
    %cst_14 = arith.constant dense<0.000000e+00> : vector<128xf32>
    %17 = vector.multi_reduction <add>, %16, %cst_14 [0] : vector<64x128xf32> to vector<128xf32>
    %18 = vector.shape_cast %17 : vector<128xf32> to vector<1x128xf32>
    %19 = vector.broadcast %14 : vector<1x1xf32> to vector<1x128xf32>
    %20 = arith.addf %18, %19 : vector<1x128xf32>
    %c0_15 = arith.constant 0 : index
    %c0_16 = arith.constant 0 : index
    %21 = vector.load %arg8[%c0_15, %c0_16] : memref<1x128xf32, #tpu.memory_space<vmem>>, vector<1x128xf32>
    tpu.vector_store %arg8[%c0_15, %c0_16], %20 {strides = array<i32>} : memref<1x128xf32, #tpu.memory_space<vmem>>, vector<1x128xf32>,
    return
  }
  func.func @transform_0(%arg0: i32) -> (i32, i32) {
    %c0_i32 = arith.constant 0 : i32
    %c0_i32_0 = arith.constant 0 : i32
    return %arg0, %c0_i32 : i32, i32
  }
  func.func @transform_1(%arg0: i32) -> (i32, i32) {
    %c0_i32 = arith.constant 0 : i32
    %c0_i32_0 = arith.constant 0 : i32
    %c0_i32_1 = arith.constant 0 : i32
    return %c0_i32, %c0_i32_0 : i32, i32
  }
  func.func @transform_2(%arg0: i32) -> (i32, i32) {
    %c0_i32 = arith.constant 0 : i32
    %c0_i32_0 = arith.constant 0 : i32
    %c0_i32_1 = arith.constant 0 : i32
    return %c0_i32, %c0_i32_0 : i32, i32
  }
  func.func @transform_3(%arg0: i32) -> (i32, i32) {
    %c0_i32 = arith.constant 0 : i32
    %c0_i32_0 = arith.constant 0 : i32
    %c0_i32_1 = arith.constant 0 : i32
    return %c0_i32, %c0_i32_0 : i32, i32
  }
  func.func @transform_4(%arg0: i32) -> (i32, i32) {
    %c0_i32 = arith.constant 0 : i32
    %c0_i32_0 = arith.constant 0 : i32
    %c0_i32_1 = arith.constant 0 : i32
    return %c0_i32, %c0_i32_0 : i32, i32
  }
  func.func @transform_5(%arg0: i32) -> (i32, i32) {
    %c0_i32 = arith.constant 0 : i32
    %c0_i32_0 = arith.constant 0 : i32
    %c0_i32_1 = arith.constant 0 : i32
    return %c0_i32, %c0_i32_0 : i32, i32
  }
  func.func @transform_6(%arg0: i32) -> (i32, i32) {
    %c0_i32 = arith.constant 0 : i32
    %c0_i32_0 = arith.constant 0 : i32
    %c0_i32_1 = arith.constant 0 : i32
    return %c0_i32, %c0_i32_0 : i32, i32
  }
  func.func @transform_7(%arg0: i32) -> (i32, i32) {
    %c0_i32 = arith.constant 0 : i32
    %c0_i32_0 = arith.constant 0 : i32
    return %c0_i32, %arg0 : i32, i32
  }
}

</mosaic_0001>

<bundles_post_ra>
// kernel: transnet_forward.1
= control target key start
LH: loop header
LB: loop body
LE: loop exit
PB: predicated region body
PF: predicated region fallthrough
CT: control target
= control target key end

     0   :  { %s2584_s0 = inlined_call_operand.vmem [shape: f32[256,2], index: 0, kind: input, shape index: {}]   ;;  %s2585_s1 = inlined_call_operand.vmem [shape: f32[64,2], index: 1, kind: input, shape index: {}]   ;;  %s2586_s2 = inlined_call_operand.vmem [shape: f32[64,1], index: 2, kind: input, shape index: {}]   ;;  %s2587_s3 = inlined_call_operand.vmem [shape: f32[64,64], index: 3, kind: input, shape index: {}]   ;;  %s2588_s4 = inlined_call_operand.vmem [shape: f32[64,1], index: 4, kind: input, shape index: {}]   ;;  %s2589_s5 = inlined_call_operand.vmem [shape: f32[64,1], index: 5, kind: input, shape index: {}]   ;;  %s2590_s6 = inlined_call_operand.<no memory space> [shape: f32[1,1], index: 6, kind: input, shape index: {}]   ;;  %s2591_s7 = inlined_call_operand.hbm [shape: f32[1,256], index: 7, kind: output, shape index: {}]  }
   0x1   :  { %v12_v0 = vstv %s2590_s6 }
   0x2   :  { %13 = vst [vmem:[#allocation2] sm:$0x1] %v12_v0 }
   0x3   :  { %14 = vsyncpa [#allocation4], 0 }
   0x4   :  { %16 = vsyncpa [#allocation4 + $0x1], 0  ;;  %s1871_s26 = smov 0   ;;  %s1873_s27 = smov 0  }
   0x5   :  { %s1875_s28 = smov 0   ;;  %s1877_s29 = smov 0  }
   0x6 LB: > { %s1892_s6 = sadd.s32 4294967295, %s1825_s29   ;;  %s1680_s30 = sadd.s32 4294967294, %s1825_s29   ;;  %s1825_s29 = sphi %s1877_s29, %s2599_s29   ;;  %s1821_s28 = sphi %s1875_s28, %s2598_s28   ;;  %s1817_s27 = sphi %s1873_s27, %s2597_s27   ;;  %s1813_s26 = sphi %s1871_s26, %s2596_s26  }
   0x7   : > { %s1896_s8 = sadd.s32 1, %s1825_s29   ;;  %s181_s9 = sadd.s32 1, %s1821_s28 }
   0x8   : > { %s178_s10 = ssub.s32 %s1825_s29, %s1896_s8  ;;  %p191_p0 = scmp.ne.s32.totalorder %s1821_s28, %s1817_s27 }
   0x9   : > { %p179_p1 = scmp.eq.s32.totalorder %s178_s10, 0  ;;  %p192_p2 = scmp.eq.s32.totalorder %s1892_s6, 1 }
   0xa   : > { %p197_p3 = scmp.ne.s32.totalorder %s1817_s27, %s1813_s26  ;;  %p198_p4 = scmp.eq.s32.totalorder %s1680_s30, 1 }
   0xb   : > { %s1907_s11 = scalar_select %p179_p1, %s1821_s28, %s181_s9  }
   0xc   : > { %p1909_p5 = por %p192_p2, %p191_p0  ;;  %p1913_p6 = por %p198_p4, %p197_p3 }
   0xd   : > { %p1683_p7 = scmp.ge.s32.totalorder %s1825_s29, 1  ;;  %p243_p8 = scmp.lt.s32.totalorder %s1825_s29, 3 }
   0xf   : > { %p244_p9 = pnand %p1683_p7, %p243_p8 }
  0x10   : > { %s1684_s14 = sshll.u32 (!%p244_p9), %s1892_s6, 4  ;;  %s272_s24 = sand.u32 (!%p244_p9), 1, %s1817_s27  }
  0x11   : > { %247 = sbr.rel (%p244_p9) target bundleno = 662 (0x296), region = 48  ;;  %p275_p10 = scmp.lt.s32.totalorder (!%p244_p9), %s1684_s14, 31 }
  0x12   : > { %s1621_s9 = scalar_lea.hbm (!%p244_p9), %s2591_s7, %s1892_s6  ;;  %s273_s10 = scalar_lea.vmem (!%p244_p9), [#allocation3], %s272_s24 }
  0x13   : > { %s1613_s16 = scalar_lea.sflag (!%p244_p9), [#allocation4], %s272_s24  ;;  %s1783_s20 = scalar_lea.hbm (!%p244_p9), %s2591_s7, 2 }
  0x16   : > { %s2601_s14 = smov (!%p275_p10, %s1684_s14), 31  ;;  %vm352_vm0 = vcmask 15360   ;;  %vm1047_vm1 = vcmask 523264  }
  0x17   : > { %s1685_s15 = sshll.u32 %s2601_s14, 3  ;;  %s1623_s14 = sshll.u32 %s273_s10, 4  ;;  %s1624_s14 = int_to_ptr.vmem [resolvable:$true] %s1623_s14 }
  0x18   : > { %s1923_s18 = scalar_lea.vmem %s2584_s0, %s1685_s15  ;;  %s1625_s15 = sshll.u32 %s1621_s9, 4  ;;  %s1626_s15 = int_to_ptr.hbm [resolvable:$true] %s1625_s15 }
  0x19   : > { %v311_v1 = vld [vmem:[%s1923_s18 + $0x78] sm:$0xff]  ;;  %v310_v2 = vld [vmem:[%s1923_s18 + $0x70] sm:$0xff]  ;;  %v309_v3 = vld [vmem:[%s1923_s18 + $0x68] sm:$0xff]  ;;  %s1777_s17 = sshra.s32 %s1626_s15, 4  ;;  %s1778_s17 = int_to_ptr.hbm [resolvable:$true] %s1777_s17 }
  0x1a   : > { %v423_v4 = vsel %vm352_vm0, %v311_v1, 0  ;;  %v420_v5 = vsel %vm352_vm0, %v310_v2, 0  ;;  %v417_v6 = vsel %vm352_vm0, %v309_v3, 0  ;;  %v308_v7 = vld [vmem:[%s1923_s18 + $0x60] sm:$0xff]  ;;  %v307_v8 = vld [vmem:[%s1923_s18 + $0x58] sm:$0xff]  ;;  %v306_v18 = vld [vmem:[%s1923_s18 + $0x50] sm:$0xff]  ;;  %p1784_p0 = scmp.lt.s32.totalorder %s1778_s17, %s2591_s7 }
  0x1b   : > { %v1933_v9 = vand.u32 4294901760, %v423_v4  ;;  %v1935_v10 = vand.u32 4294901760, %v420_v5  ;;  %v1937_v11 = vand.u32 4294901760, %v417_v6  ;;  %v414_v12 = vsel %vm352_vm0, %v308_v7, 0  ;;  %v305_v27 = vld [vmem:[%s1923_s18 + $0x48] sm:$0xff]  ;;  %v304_v35 = vld [vmem:[%s1923_s18 + $0x40] sm:$0xff] }
  0x1c   : > { %v1940_v13 = vand.u32 4294901760, %v414_v12  ;;  %v411_v17 = vsel %vm352_vm0, %v307_v8, 0  ;;  %v408_v22 = vsel %vm352_vm0, %v306_v18, 0  ;;  %v405_v30 = vsel %vm352_vm0, %v305_v27, 0  ;;  %v303_v42 = vld [vmem:[%s1923_s18 + $0x38] sm:$0xff]  ;;  %v302_v49 = vld [vmem:[%s1923_s18 + $0x30] sm:$0xff] }
  0x1d   : > { %426 = vmatpush.xpose.msra.mxu0 %v1933_v9  ;;  %v1944_v14 = vsub.f32 %v423_v4, %v1933_v9  ;;  %741 = vmatpush.xpose.msra.mxu3 %v1933_v9  ;;  %v1948_v15 = vsub.f32 %v420_v5, %v1935_v10  ;;  %v1951_v16 = vsub.f32 %v417_v6, %v1937_v11  ;;  %v1958_v21 = vand.u32 4294901760, %v411_v17  ;;  %v301_v55 = vld [vmem:[%s1923_s18 + $0x28] sm:$0xff]  ;;  %v300_v63 = vld [vmem:[%s1923_s18 + $0x20] sm:$0xff]  ;;  %v299_v6 = vld [vmem:[%s1923_s18 + $0x18] sm:$0xff] }
  0x1e   : > { %v1971_v26 = vsub.f32 %v414_v12, %v1940_v13  ;;  %v1975_v29 = vand.u32 4294901760, %v408_v22  ;;  %v1989_v36 = vand.u32 4294901760, %v405_v30  ;;  %v402_v41 = vsel %vm352_vm0, %v304_v35, 0  ;;  %v298_v27 = vld [vmem:[%s1923_s18 + $0x10] sm:$0xff] }
  0x1f   : > { %653 = vmatpush.xpose.msra.mxu2 %v1944_v14  ;;  %v524_v19 = vand.u32 4294901760, %v1944_v14  ;;  %v530_v20 = vand.u32 4294901760, %v1948_v15  ;;  %v536_v25 = vand.u32 4294901760, %v1951_v16  ;;  %v1984_v34 = vsub.f32 %v411_v17, %v1958_v21  ;;  %v293_v17 = vld [vmem:[%s2586_s2 + $0x28] sm:$0xff] }
  0x20   : > { %v542_v33 = vand.u32 4294901760, %v1971_v26  ;;  %v1997_v40 = vsub.f32 %v408_v22, %v1975_v29  ;;  %v2004_v43 = vsub.f32 %v405_v30, %v1989_v36  ;;  %v2010_v46 = vand.u32 4294901760, %v402_v41 }
  0x21   : > { %428 = vmatpush.xpose.msra.mxu0 %v1935_v10  ;;  %v525_v23 = vsub.f32 %v1944_v14, %v524_v19  ;;  %743 = vmatpush.xpose.msra.mxu3 %v1935_v10  ;;  %v531_v24 = vsub.f32 %v1948_v15, %v530_v20  ;;  %v537_v32 = vsub.f32 %v1951_v16, %v536_v25  ;;  %v548_v39 = vand.u32 4294901760, %v1984_v34 }
  0x22   : > { %v543_v38 = vsub.f32 %v1971_v26, %v542_v33  ;;  %v554_v47 = vand.u32 4294901760, %v1997_v40  ;;  %v399_v48 = vsel %vm352_vm0, %v303_v42, 0  ;;  %v560_v50 = vand.u32 4294901760, %v2004_v43 }
  0x23   : > { %v526_v28 = vand.u32 4294901760, %v525_v23  ;;  %656 = vmatpush.xpose.msra.mxu2 %v1948_v15  ;;  %v532_v31 = vand.u32 4294901760, %v531_v24  ;;  %v538_v37 = vand.u32 4294901760, %v537_v32  ;;  %v549_v45 = vsub.f32 %v1984_v34, %v548_v39 }
  0x24   : > { %v544_v44 = vand.u32 4294901760, %v543_v38  ;;  %v555_v52 = vsub.f32 %v1997_v40, %v554_v47  ;;  %v2022_v53 = vand.u32 4294901760, %v399_v48  ;;  %v2025_v54 = vsub.f32 %v402_v41, %v2010_v46  ;;  %v280_v38 = vld [vmem:[%s2585_s1] sm:$0xff]  ;;  %v297_v41 = vld [vmem:[%s1923_s18 + $0x8] sm:$0xff] }
  0x25   : > { %430 = vmatpush.xpose.msra.mxu0 %v1937_v11  ;;  %527 = vmatpush.xpose.msra.mxu1 %v526_v28  ;;  %v550_v51 = vand.u32 4294901760, %v549_v45  ;;  %v396_v56 = vsel %vm352_vm0, %v302_v49, 0  ;;  %v561_v57 = vsub.f32 %v2004_v43, %v560_v50  ;;  %v393_v58 = vsel %vm352_vm0, %v301_v55, 0  ;;  %v295_v45 = vld [vmem:[%s2586_s2 + $0x38] sm:$0xff] }
  0x26   : > { %745 = vmatpush.xpose.msra.mxu3 %v1937_v11  ;;  %v556_v59 = vand.u32 4294901760, %v555_v52  ;;  %v2036_v60 = vand.u32 4294901760, %v396_v56  ;;  %v566_v61 = vand.u32 4294901760, %v2025_v54  ;;  %v2040_v62 = vsub.f32 %v399_v48, %v2022_v53  ;;  %v292_v48 = vld [vmem:[%s2586_s2 + $0x20] sm:$0xff] }
  0x27   : > { %659 = vmatpush.xpose.msra.mxu2 %v1951_v16  ;;  %v562_v0 = vand.u32 4294901760, %v561_v57  ;;  %v2045_v1 = vand.u32 4294901760, %v393_v58  ;;  %v390_v2 = vsel %vm352_vm0, %v300_v63, 0  ;;  %v1827_v7 = vmov 0   ;;  %v296_v57 = vld [vmem:[%s1923_s18] sm:$0xff]  ;;  %s1779_s18 = scalar_lea.hbm %s1778_s17, 1 }
  0x28   : > { %v567_v3 = vsub.f32 %v2025_v54, %v566_v61  ;;  %v572_v4 = vand.u32 4294901760, %v2040_v62  ;;  %v2054_v5 = vsub.f32 %v396_v56, %v2036_v60  ;;  %1729 = vset.pattern.permute.xlu1 %v1827_v7  ;;  %1728 = vset.pattern.permute.xlu0 %v1827_v7  ;;  %v2059_v8 = vand.u32 4294901760, %v390_v2  ;;  %p1780_p11 = scmp.ne.s32.totalorder %s1778_s17, %s1779_s18  ;;  %p1785_p1 = scmp.lt.s32.totalorder %s1783_s20, %s1779_s18 }
  0x29   : > { %432 = vmatpush.xpose.msra.mxu0 %v1940_v13  ;;  %533 = vmatpush.xpose.msra.mxu1 %v532_v31  ;;  %v2062_v12 = vsub.f32 %v393_v58, %v2045_v1  ;;  %v387_v24 = vsel %vm352_vm0, %v299_v6, 0  ;;  %v354_v55 = vsel %vm352_vm0, %v280_v38, 0  ;;  %v381_v56 = vsel %vm352_vm0, %v297_v41, 0 }
  0x2a   : > { %747 = vmatpush.xpose.msra.mxu3 %v1940_v13  ;;  %1730 = vset.pattern.permute.xlu2 %v1827_v7  ;;  %v568_v18 = vand.u32 4294901760, %v567_v3  ;;  %v573_v22 = vsub.f32 %v2040_v62, %v572_v4  ;;  %v578_v23 = vand.u32 4294901760, %v2054_v5  ;;  %v2076_v28 = vand.u32 4294901760, %v387_v24  ;;  %v281_v7 = vld [vmem:[%s2585_s1 + $0x8] sm:$0xff]  ;;  %p1781_p12 = pnand %p1780_p11, %p1909_p5  ;;  %p1786_p2 = por %p1785_p1, %p1784_p0 }
  0x2b   : > { %662 = vmatpush.xpose.msra.mxu2 %v1971_v26  ;;  %339 = vperm.xlu1 %1729, %v293_v17   ;;  %v2079_v30 = vsub.f32 %v390_v2, %v2059_v8  ;;  %v584_v35 = vand.u32 4294901760, %v2062_v12  ;;  %v2118_v63 = vand.u32 4294901760, %v354_v55  ;;  %v2121_v2 = vand.u32 4294901760, %v381_v56 }
  0x2c   : > { %v574_v31 = vand.u32 4294901760, %v573_v22  ;;  %v579_v32 = vsub.f32 %v2054_v5, %v578_v23  ;;  %349 = vperm.xlu0 %1728, %v295_v45   ;;  %v378_v6 = vsel %vm352_vm0, %v296_v57, 0  ;;  %v357_v38 = vsel %vm352_vm0, %v281_v7, 0  ;;  %p1782_p13 = pneg %p1781_p12 }
  0x2d   : > { %434 = vmatpush.xpose.msra.mxu0 %v1958_v21  ;;  %539 = vmatpush.xpose.msra.mxu1 %v538_v37  ;;  %v384_v37 = vsel %vm352_vm0, %v298_v27, 0  ;;  %v590_v42 = vand.u32 4294901760, %v2079_v30  ;;  %v458_v22 = vsub.f32 %v354_v55, %v2118_v63  ;;  %v288_v27 = vld [vmem:[%s2586_s2] sm:$0xff]  ;;  %v2152_v45 = vand.u32 4294901760, %v357_v38 }
  0x2e   : > { %749 = vmatpush.xpose.msra.mxu3 %v1958_v21  ;;  %v580_v49 = vand.u32 4294901760, %v579_v32  ;;  %v2107_v52 = vand.u32 4294901760, %v384_v37  ;;  %p1787_p3 = pnand %p1786_p2, %p1782_p13 }
  0x2f   : > { %665 = vmatpush.xpose.msra.mxu2 %v1984_v34  ;;  %v591_v58 = vsub.f32 %v2079_v30, %v590_v42  ;;  %v459_v41 = vand.u32 4294901760, %v458_v22 }
  0x30   : > { %v2124_v3 = vsub.f32 %v384_v37, %v2107_v52  ;;  %v2147_v37 = vsub.f32 %v381_v56, %v2121_v2  ;;  %v282_v56 = vld [vmem:[%s2585_s1 + $0x10] sm:$0xff] }
  0x31   : > { %436 = vmatpush.xpose.msra.mxu0 %v1975_v29  ;;  %545 = vmatpush.xpose.msra.mxu1 %v544_v44  ;;  %v2095_v44 = vsub.f32 %v387_v24, %v2076_v28  ;;  %v592_v17 = vand.u32 4294901760, %v591_v58  ;;  %v294_v24 = vld [vmem:[%s2586_s2 + $0x30] sm:$0xff]  ;;  %v460_v57 = vsub.f32 %v458_v22, %v459_v41  ;;  %v466_v58 = vsub.f32 %v357_v38, %v2152_v45 }
  0x32   : > { %751 = vmatpush.xpose.msra.mxu3 %v1975_v29  ;;  %v602_v32 = vand.u32 4294901760, %v2124_v3 }
  0x33   : > { %668 = vmatpush.xpose.msra.mxu2 %v1997_v40  ;;  %334 = vperm.xlu1 %1729, %v292_v48  }
  0x34   : > { %344 = vperm.xlu0 %1728, %v294_v24   ;;  %v461_v24 = vand.u32 4294901760, %v460_v57 }
  0x35   : > { %438 = vmatpush.xpose.msra.mxu0 %v1989_v36  ;;  %551 = vmatpush.xpose.msra.mxu1 %v550_v51  ;;  %v585_v51 = vsub.f32 %v2062_v12, %v584_v35 }
  0x36   : > { %753 = vmatpush.xpose.msra.mxu3 %v1989_v36 }
  0x37   : > { %671 = vmatpush.xpose.msra.mxu2 %v2004_v43 }
  0x39   : > { %440 = vmatpush.xpose.msra.mxu0 %v2010_v46  ;;  %557 = vmatpush.xpose.msra.mxu1 %v556_v59  ;;  %v596_v59 = vand.u32 4294901760, %v2095_v44 }
  0x3a   : > { %755 = vmatpush.xpose.msra.mxu3 %v2010_v46 }
  0x3b   : > { %674 = vmatpush.xpose.msra.mxu2 %v2025_v54  ;;  %314 = vperm.xlu1 %1729, %v288_v27   ;;  %v467_v27 = vand.u32 4294901760, %v466_v58 }
  0x3d   : > { %442 = vmatpush.xpose.msra.mxu0 %v2022_v53  ;;  %563 = vmatpush.xpose.msra.mxu1 %v562_v0  ;;  %v586_v0 = vand.u32 4294901760, %v585_v51  ;;  %v608_v51 = vand.u32 4294901760, %v2147_v37  ;;  %v468_v57 = vsub.f32 %v466_v58, %v467_v27 }
  0x3e   : > { %757 = vmatpush.xpose.msra.mxu3 %v2022_v53 }
  0x3f   : > { %677 = vmatpush.xpose.msra.mxu2 %v2040_v62  ;;  %v609_v7 = vsub.f32 %v2147_v37, %v608_v51  ;;  %v469_v14 = vand.u32 4294901760, %v468_v57 }
  0x41   : > { %444 = vmatpush.xpose.msra.mxu0 %v2036_v60  ;;  %569 = vmatpush.xpose.msra.mxu1 %v568_v18  ;;  %v597_v18 = vsub.f32 %v2095_v44, %v596_v59 }
  0x42   : > { %759 = vmatpush.xpose.msra.mxu3 %v2036_v60 }
  0x43   : > { %680 = vmatpush.xpose.msra.mxu2 %v2054_v5  ;;  %v598_v48 = vand.u32 4294901760, %v597_v18  ;;  %v360_v18 = vsel %vm352_vm0, %v282_v56, 0  ;;  %v283_v56 = vld [vmem:[%s2585_s1 + $0x18] sm:$0xff] }
  0x44   : > { %v2179_v38 = vand.u32 4294901760, %v360_v18 }
  0x45   : > { %446 = vmatpush.xpose.msra.mxu0 %v2045_v1  ;;  %575 = vmatpush.xpose.msra.mxu1 %v574_v31  ;;  %v2143_v31 = vand.u32 4294901760, %v378_v6 }
  0x46   : > { %761 = vmatpush.xpose.msra.mxu3 %v2045_v1 }
  0x47   : > { %683 = vmatpush.xpose.msra.mxu2 %v2062_v12  ;;  %v2160_v55 = vsub.f32 %v378_v6, %v2143_v31 }
  0x49   : > { %448 = vmatpush.xpose.msra.mxu0 %v2059_v8  ;;  %581 = vmatpush.xpose.msra.mxu1 %v580_v49  ;;  %v603_v49 = vsub.f32 %v2124_v3, %v602_v32 }
  0x4a   : > { %763 = vmatpush.xpose.msra.mxu3 %v2059_v8 }
  0x4b   : > { %686 = vmatpush.xpose.msra.mxu2 %v2079_v30  ;;  %v604_v6 = vand.u32 4294901760, %v603_v49  ;;  %v1004_v30 = vld [vmem:[%s2588_s4 + $0x28] sm:$0xff] }
  0x4d   : > { %450 = vmatpush.xpose.msra.mxu0 %v2076_v28  ;;  %587 = vmatpush.xpose.msra.mxu1 %v586_v0  ;;  %v289_v0 = vld [vmem:[%s2586_s2 + $0x8] sm:$0xff] }
  0x4e   : > { %765 = vmatpush.xpose.msra.mxu3 %v2076_v28  ;;  %319 = vperm.xlu0 %1728, %v289_v0   ;;  %v474_v0 = vsub.f32 %v360_v18, %v2179_v38  ;;  %v285_v18 = vld [vmem:[%s2585_s1 + $0x28] sm:$0xff] }
  0x4f   : > { %689 = vmatpush.xpose.msra.mxu2 %v2095_v44  ;;  %v369_v34 = vsel %vm352_vm0, %v285_v18, 0  ;;  %v1539_v44 = vld [vmem:[%s2589_s5 + $0x28] sm:$0xff] }
  0x51   : > { %452 = vmatpush.xpose.msra.mxu0 %v2107_v52  ;;  %593 = vmatpush.xpose.msra.mxu1 %v592_v17  ;;  %v2592_v17 = vand.u32 4294901760, %v2160_v55 }
  0x52   : > { %767 = vmatpush.xpose.msra.mxu3 %v2107_v52 }
  0x53   : > { %692 = vmatpush.xpose.msra.mxu2 %v2124_v3  ;;  %v615_v49 = vsub.f32 %v2160_v55, %v2592_v17  ;;  %v1540_v3 = vld [vmem:[%s2589_s5 + $0x30] sm:$0xff] }
  0x55   : > { %454 = vmatpush.xpose.msra.mxu0 %v2121_v2  ;;  %599 = vmatpush.xpose.msra.mxu1 %v598_v48  ;;  %v610_v48 = vand.u32 4294901760, %v609_v7  ;;  %v363_v7 = vsel %vm352_vm0, %v283_v56, 0 }
  0x56   : > { %769 = vmatpush.xpose.msra.mxu3 %v2121_v2  ;;  %v2196_v17 = vand.u32 4294901760, %v363_v7 }
  0x57   : > { %695 = vmatpush.xpose.msra.mxu2 %v2147_v37 }
  0x58   : > { %v482_v15 = vsub.f32 %v363_v7, %v2196_v17 }
  0x59   : > { %456 = vmatpush.xpose.msra.mxu0 %v2143_v31  ;;  %605 = vmatpush.xpose.msra.mxu1 %v604_v6  ;;  %v616_v6 = vand.u32 4294901760, %v615_v49 }
  0x5a   : > { %771 = vmatpush.xpose.msra.mxu3 %v2143_v31  ;;  %v483_v16 = vand.u32 4294901760, %v482_v15 }
  0x5b   : > { %698 = vmatpush.xpose.msra.mxu2 %v2160_v55 }
  0x5c   : > { %462 = vmatmul.f32.vlgmr.msra.gmra.mxu0 %v461_v24  ;;  %v484_v26 = vsub.f32 %v482_v15, %v483_v16  ;;  %v286_v24 = vld [vmem:[%s2585_s1 + $0x30] sm:$0xff] }
  0x5d   : > { %824 = vmatpush.xpose.msrb.mxu0 %v524_v19  ;;  %611 = vmatpush.xpose.msra.mxu1 %v610_v48  ;;  %v475_v19 = vand.u32 4294901760, %v474_v0  ;;  %v372_v43 = vsel %vm352_vm0, %v286_v24, 0  ;;  %v287_v48 = vld [vmem:[%s2585_s1 + $0x38] sm:$0xff] }
  0x5e   : > { %775 = vmatmul.f32.vlgmr.msra.gmra.mxu3 %v459_v41  ;;  %701 = vmatmul.f32.vlgmr.msra.gmra.mxu2 %v458_v22  ;;  %v284_v41 = vld [vmem:[%s2585_s1 + $0x20] sm:$0xff] }
  0x5f   : > { %v476_v22 = vsub.f32 %v474_v0, %v475_v19 }
  0x61   : > { %828 = vmatpush.xpose.msrb.mxu0 %v530_v20  ;;  %617 = vmatpush.xpose.msra.mxu1 %v616_v6  ;;  %v366_v20 = vsel %vm352_vm0, %v284_v41, 0 }
  0x64   : > { %470 = vmatmul.f32.gmra.mxu0 %v469_v14  ;;  %619 = vmatmul.f32.vlgmr.msra.gmra.mxu1 %v2118_v63 }
  0x65   : > { %832 = vmatpush.xpose.msrb.mxu0 %v536_v25  ;;  %919 = vmatpush.xpose.msrb.mxu1 %v1933_v9  ;;  %v477_v9 = vand.u32 4294901760, %v476_v22  ;;  %v2210_v25 = vand.u32 4294901760, %v366_v20 }
  0x66   : > { %781 = vmatmul.f32.gmra.mxu3 %v467_v27  ;;  %706 = vmatmul.f32.gmra.mxu2 %v466_v58  ;;  %v2227_v58 = vand.u32 4294901760, %v369_v34  ;;  %v2244_v27 = vand.u32 4294901760, %v372_v43 }
  0x69   : > { %836 = vmatpush.xpose.msrb.mxu0 %v542_v33  ;;  %921 = vmatpush.xpose.msrb.mxu1 %v1935_v10  ;;  %v490_v33 = vsub.f32 %v366_v20, %v2210_v25  ;;  %v291_v10 = vld [vmem:[%s2586_s2 + $0x18] sm:$0xff] }
  0x6a   : > { %329 = vperm.xlu2 %1730, %v291_v10  }
  0x6c   : > { %478 = vmatmul.f32.gmra.mxu0 %v477_v9  ;;  %623 = vmatmul.f32.gmra.mxu1 %v2152_v45 }
  0x6d   : > { %840 = vmatpush.xpose.msrb.mxu0 %v548_v39  ;;  %923 = vmatpush.xpose.msrb.mxu1 %v1937_v11  ;;  %v485_v11 = vand.u32 4294901760, %v484_v26  ;;  %v491_v39 = vand.u32 4294901760, %v490_v33 }
  0x6e   : > { %787 = vmatmul.f32.gmra.mxu3 %v475_v19  ;;  %711 = vmatmul.f32.gmra.mxu2 %v474_v0 }
  0x6f   : > { %v492_v40 = vsub.f32 %v490_v33, %v491_v39 }
  0x71   : > { %844 = vmatpush.xpose.msrb.mxu0 %v554_v47  ;;  %925 = vmatpush.xpose.msrb.mxu1 %v1940_v13  ;;  %v498_v47 = vsub.f32 %v369_v34, %v2227_v58  ;;  %v290_v13 = vld [vmem:[%s2586_s2 + $0x10] sm:$0xff] }
  0x72   : > { %324 = vperm.xlu2 %1730, %v290_v13  }
  0x74   : > { %486 = vmatmul.f32.gmra.mxu0 %v485_v11  ;;  %627 = vmatmul.f32.gmra.mxu1 %v2179_v38 }
  0x75   : > { %848 = vmatpush.xpose.msrb.mxu0 %v560_v50  ;;  %927 = vmatpush.xpose.msrb.mxu1 %v1958_v21  ;;  %v493_v21 = vand.u32 4294901760, %v492_v40  ;;  %v499_v50 = vand.u32 4294901760, %v498_v47 }
  0x76   : > { %793 = vmatmul.f32.gmra.mxu3 %v483_v16  ;;  %716 = vmatmul.f32.gmra.mxu2 %v482_v15 }
  0x77   : > { %v500_v54 = vsub.f32 %v498_v47, %v499_v50 }
  0x79   : > { %852 = vmatpush.xpose.msrb.mxu0 %v566_v61  ;;  %929 = vmatpush.xpose.msrb.mxu1 %v1975_v29  ;;  %v506_v61 = vsub.f32 %v372_v43, %v2244_v27  ;;  %v375_v29 = vsel %vm352_vm0, %v287_v48, 0  ;;  %v501_v62 = vand.u32 4294901760, %v500_v54 }
  0x7a   : > { %v2258_v49 = vand.u32 4294901760, %v375_v29 }
  0x7c   : > { %494 = vmatmul.f32.gmra.mxu0 %v493_v21  ;;  %631 = vmatmul.f32.gmra.mxu1 %v2196_v17  ;;  %v514_v56 = vsub.f32 %v375_v29, %v2258_v49 }
  0x7d   : > { %856 = vmatpush.xpose.msrb.mxu0 %v572_v4  ;;  %931 = vmatpush.xpose.msrb.mxu1 %v1989_v36  ;;  %v507_v4 = vand.u32 4294901760, %v506_v61 }
  0x7e   : > { %799 = vmatmul.f32.gmra.mxu3 %v491_v39  ;;  %721 = vmatmul.f32.gmra.mxu2 %v490_v33  ;;  %v515_v5 = vand.u32 4294901760, %v514_v56 }
  0x7f   : > { %v508_v36 = vsub.f32 %v506_v61, %v507_v4 }
  0x81   : > { %860 = vmatpush.xpose.msrb.mxu0 %v578_v23  ;;  %933 = vmatpush.xpose.msrb.mxu1 %v2010_v46  ;;  %v509_v46 = vand.u32 4294901760, %v508_v36  ;;  %v1003_v23 = vld [vmem:[%s2588_s4 + $0x20] sm:$0xff] }
  0x84   : > { %502 = vmatmul.f32.gmra.mxu0 %v501_v62  ;;  %635 = vmatmul.f32.gmra.mxu1 %v2210_v25 }
  0x85   : > { %864 = vmatpush.xpose.msrb.mxu0 %v584_v35  ;;  %935 = vmatpush.xpose.msrb.mxu1 %v2022_v53  ;;  %v516_v53 = vsub.f32 %v514_v56, %v515_v5  ;;  %v1536_v35 = vld [vmem:[%s2589_s5 + $0x10] sm:$0xff] }
  0x86   : > { %805 = vmatmul.f32.gmra.mxu3 %v499_v50  ;;  %726 = vmatmul.f32.gmra.mxu2 %v498_v47 }
  0x87   : > { %v517_v12 = vand.u32 4294901760, %v516_v53 }
  0x89   : > { %868 = vmatpush.xpose.msrb.mxu0 %v590_v42  ;;  %937 = vmatpush.xpose.msrb.mxu1 %v2036_v60  ;;  %v1000_v60 = vld [vmem:[%s2588_s4 + $0x8] sm:$0xff]  ;;  %v1534_v42 = vld [vmem:[%s2589_s5] sm:$0xff] }
  0x8a   : > { %1014 = vperm.xlu0 %1728, %v1000_v60  }
  0x8c   : > { %510 = vmatmul.f32.gmra.mxu0 %v509_v46  ;;  %639 = vmatmul.f32.gmra.mxu1 %v2227_v58 }
  0x8d   : > { %872 = vmatpush.xpose.msrb.mxu0 %v596_v59  ;;  %939 = vmatpush.xpose.msrb.mxu1 %v2045_v1  ;;  %v2595_v1 = vand.u32 4294901760, %v2160_v55  ;;  %v1537_v59 = vld [vmem:[%s2589_s5 + $0x18] sm:$0xff] }
  0x8e   : > { %811 = vmatmul.f32.gmra.mxu3 %v507_v4  ;;  %731 = vmatmul.f32.gmra.mxu2 %v506_v61 }
  0x91   : > { %876 = vmatpush.xpose.msrb.mxu0 %v602_v32  ;;  %941 = vmatpush.xpose.msrb.mxu1 %v2059_v8  ;;  %v1001_v8 = vld [vmem:[%s2588_s4 + $0x10] sm:$0xff]  ;;  %v1535_v32 = vld [vmem:[%s2589_s5 + $0x8] sm:$0xff] }
  0x92   : > { %1029 = vperm.xlu0 %1728, %v1003_v23   ;;  %1019 = vperm.xlu1 %1729, %v1001_v8  }
  0x94   : > { %518 = vmatmul.f32.gmra.mxu0 %v517_v12  ;;  %643 = vmatmul.f32.gmra.mxu1 %v2244_v27 }
  0x95   : > { %880 = vmatpush.xpose.msrb.mxu0 %v608_v51  ;;  %943 = vmatpush.xpose.msrb.mxu1 %v2076_v28  ;;  %v1006_v28 = vld [vmem:[%s2588_s4 + $0x38] sm:$0xff] }
  0x96   : > { %817 = vmatmul.f32.gmra.mxu3 %v515_v5  ;;  %736 = vmatmul.f32.gmra.mxu2 %v514_v56 }
  0x99   : > { %884 = vmatpush.xpose.msrb.mxu0 %v2595_v1  ;;  %945 = vmatpush.xpose.msrb.mxu1 %v2107_v52  ;;  %v999_v52 = vld [vmem:[%s2588_s4] sm:$0xff] }
  0x9a   : > { %1044 = vperm.xlu0 %1728, %v1006_v28   ;;  %1034 = vperm.xlu1 %1729, %v1004_v30  }
  0x9b   : > { %1009 = vperm.xlu2 %1730, %v999_v52  }
  0x9c   : > { %647 = vmatmul.f32.gmra.mxu1 %v2258_v49  ;;  %886 = vmatmul.f32.vlgmr.msrb.gmra.mxu0 %v2118_v63 }
  0x9d   : > { %947 = vmatpush.xpose.msrb.mxu1 %v2121_v2  ;;  %v1002_v2 = vld [vmem:[%s2588_s4 + $0x18] sm:$0xff]  ;;  %v340_v37 = vpop.permute.xlu1 %339 }
  0x9e   : > { %v2343_v51 = vpop.permute.xlu0 %349 }
  0xa1   : > { %949 = vmatpush.xpose.msrb.mxu1 %v2143_v31  ;;  %v1005_v31 = vld [vmem:[%s2588_s4 + $0x30] sm:$0xff] }
  0xa2   : > { %1555 = vperm.xlu0 %1728, %v1536_v35   ;;  %1545 = vperm.xlu1 %1729, %v1534_v42  }
  0xa3   : > { %1024 = vperm.xlu2 %1730, %v1002_v2  }
  0xa4   : > { %890 = vmatmul.f32.gmra.mxu0 %v2152_v45  ;;  %951 = vmatmul.f32.vlgmr.msrb.gmra.mxu1 %v2118_v63  ;;  %v1542_v63 = vld [vmem:[#allocation2] sm:$0x1] }
  0xa5   : > { %v335_v55 = vpop.permute.xlu1 %334 }
  0xa6   : > { %v345_v57 = vpop.permute.xlu0 %344 }
  0xaa   : > { %1570 = vperm.xlu0 %1728, %v1539_v44   ;;  %1560 = vperm.xlu1 %1729, %v1537_v59  }
  0xab   : > { %1039 = vperm.xlu2 %1730, %v1005_v31  }
  0xac   : > { %894 = vmatmul.f32.gmra.mxu0 %v2179_v38  ;;  %955 = vmatmul.f32.gmra.mxu1 %v2152_v45  ;;  %v1538_v45 = vld [vmem:[%s2589_s5 + $0x20] sm:$0xff] }
  0xad   : > { %v315_v0 = vpop.permute.xlu1 %314 }
  0xb2   : > { %1606 = vperm.xlu0 %1728, %v1542_v63   ;;  %1575 = vperm.xlu1 %1729, %v1540_v3  }
  0xb3   : > { %1550 = vperm.xlu2 %1730, %v1535_v32  }
  0xb4   : > { %898 = vmatmul.f32.gmra.mxu0 %v2196_v17  ;;  %959 = vmatmul.f32.gmra.mxu1 %v2179_v38 }
  0xbb   : > { %1565 = vperm.xlu2 %1730, %v1538_v45  }
  0xbc   : > { %902 = vmatmul.f32.gmra.mxu0 %v2210_v25  ;;  %963 = vmatmul.f32.gmra.mxu1 %v2196_v17  ;;  %v1541_v17 = vld [vmem:[%s2589_s5 + $0x38] sm:$0xff] }
  0xc0   : > { %v320_v20 = vpop.permute.xlu0 %319 }
  0xc3   : > { %1580 = vperm.xlu2 %1730, %v1541_v17  }
  0xc4   : > { %906 = vmatmul.f32.gmra.mxu0 %v2227_v58  ;;  %967 = vmatmul.f32.gmra.mxu1 %v2210_v25  ;;  %v330_v7 = vpop.permute.xlu2 %329 }
  0xcc   : > { %910 = vmatmul.f32.gmra.mxu0 %v2244_v27  ;;  %971 = vmatmul.f32.gmra.mxu1 %v2227_v58  ;;  %v325_v10 = vpop.permute.xlu2 %324 }
  0xd4   : > { %914 = vmatmul.f32.gmra.mxu0 %v2258_v49  ;;  %975 = vmatmul.f32.gmra.mxu1 %v2244_v27 }
  0xd9   : > { %v463_v38 = vpop.f32.mrf.mxu0 }
  0xda   : > { %v464_v6 = vadd.f32 %v463_v38, %v315_v0 }
  0xdc   : > { %979 = vmatmul.f32.gmra.mxu1 %v2258_v49 }
  0xe1   : > { %v471_v14 = vpop.f32.mrf.mxu0  ;;  %v620_v19 = vpop.f32.mrf.mxu1 }
  0xe2   : > { %v621_v41 = vadd.f32 %v620_v19, %v464_v6  ;;  %v702_v22 = vpop.f32.mrf.mxu2  ;;  %v776_v15 = vpop.f32.mrf.mxu3  ;;  %v472_v25 = vadd.f32 %v471_v14, %v320_v20 }
  0xe4   : > { %v703_v9 = vadd.f32 %v702_v22, %v621_v41 }
  0xe6   : > { %v777_v16 = vadd.f32 %v776_v15, %v703_v9 }
  0xe9   : > { %v479_v18 = vpop.f32.mrf.mxu0  ;;  %v624_v26 = vpop.f32.mrf.mxu1 }
  0xea   : > { %v2351_v33 = vadd.f32 %v624_v26, %v472_v25  ;;  %v480_v34 = vadd.f32 %v479_v18, %v325_v10  ;;  %v707_v36 = vpop.f32.mrf.mxu2  ;;  %v782_v46 = vpop.f32.mrf.mxu3 }
  0xec   : > { %v708_v10 = vadd.f32 %v707_v36, %v2351_v33 }
  0xf1   : > { %v487_v11 = vpop.f32.mrf.mxu0  ;;  %v628_v39 = vpop.f32.mrf.mxu1 }
  0xf2   : > { %v629_v58 = vadd.f32 %v628_v39, %v480_v34  ;;  %v488_v24 = vadd.f32 %v487_v11, %v330_v7  ;;  %v712_v12 = vpop.f32.mrf.mxu2  ;;  %v788_v1 = vpop.f32.mrf.mxu3 }
  0xf4   : > { %v713_v9 = vadd.f32 %v712_v12, %v629_v58  ;;  %v783_v58 = vadd.f32 %v782_v46, %v708_v10 }
  0xf9   : > { %v495_v40 = vpop.f32.mrf.mxu0  ;;  %v632_v47 = vpop.f32.mrf.mxu1 }
  0xfa   : > { %v633_v13 = vadd.f32 %v632_v47, %v488_v24  ;;  %v496_v43 = vadd.f32 %v495_v40, %v335_v55  ;;  %v717_v30 = vpop.f32.mrf.mxu2  ;;  %v794_v44 = vpop.f32.mrf.mxu3  ;;  %v789_v47 = vadd.f32 %v788_v1, %v713_v9 }
  0xfc   : > { %v718_v41 = vadd.f32 %v717_v30, %v633_v13 }
  0xfe   : > { %v795_v39 = vadd.f32 %v794_v44, %v718_v41 }
 0x101   : > { %v503_v21 = vpop.f32.mrf.mxu0  ;;  %v636_v50 = vpop.f32.mrf.mxu1 }
 0x102   : > { %v637_v27 = vadd.f32 %v636_v50, %v496_v43  ;;  %v504_v48 = vadd.f32 %v503_v21, %v340_v37  ;;  %v722_v52 = vpop.f32.mrf.mxu2  ;;  %v800_v2 = vpop.f32.mrf.mxu3 }
 0x104   : > { %v723_v14 = vadd.f32 %v722_v52, %v637_v27 }
 0x109   : > { %v511_v54 = vpop.f32.mrf.mxu0  ;;  %v640_v61 = vpop.f32.mrf.mxu1 }
 0x10a   : > { %v641_v29 = vadd.f32 %v640_v61, %v504_v48  ;;  %v512_v62 = vadd.f32 %v511_v54, %v345_v57  ;;  %v727_v32 = vpop.f32.mrf.mxu2  ;;  %v806_v37 = vpop.f32.mrf.mxu3 }
 0x10c   : > { %v728_v0 = vadd.f32 %v727_v32, %v641_v29 }
 0x10e   : > { %v807_v22 = vadd.f32 %v806_v37, %v728_v0 }
 0x111   : > { %v519_v4 = vpop.f32.mrf.mxu0  ;;  %v644_v49 = vpop.f32.mrf.mxu1 }
 0x112   : > { %v645_v56 = vadd.f32 %v644_v49, %v512_v62  ;;  %v732_v17 = vpop.f32.mrf.mxu2  ;;  %v812_v38 = vpop.f32.mrf.mxu3  ;;  %v520_v6 = vadd.f32 %v519_v4, %v2343_v51 }
 0x114   : > { %v733_v7 = vadd.f32 %v732_v17, %v645_v56  ;;  %v991_v56 = vld [vmem:[%s2587_s3] sm:$0xff] }
 0x116   : > { %v813_v15 = vadd.f32 %v812_v38, %v733_v7 }
 0x119   : > { %v648_v5 = vpop.f32.mrf.mxu1  ;;  %v887_v53 = vpop.f32.mrf.mxu0 }
 0x11a   : > { %v888_v60 = vadd.f32 %v887_v53, %v777_v16  ;;  %v649_v20 = vadd.f32 %v648_v5, %v520_v6  ;;  %v801_v16 = vadd.f32 %v800_v2, %v723_v14  ;;  %v737_v25 = vpop.f32.mrf.mxu2  ;;  %v818_v43 = vpop.f32.mrf.mxu3 }
 0x11c   : > { %v738_v24 = vadd.f32 %v737_v25, %v649_v20 }
 0x11e   : > { %v819_v48 = vadd.f32 %v818_v43, %v738_v24 }
 0x121   : > { %v891_v23 = vpop.f32.mrf.mxu0  ;;  %v952_v8 = vpop.f32.mrf.mxu1 }
 0x122   : > { %v2353_v28 = vadd.f32 %v952_v8, %v888_v60  ;;  %v892_v33 = vadd.f32 %v891_v23, %v783_v58  ;;  %v1049_v60 = vsel %vm1047_vm1, %v991_v56, 0 }
 0x129   : > { %v895_v35 = vpop.f32.mrf.mxu0  ;;  %v956_v42 = vpop.f32.mrf.mxu1 }
 0x12a   : > { %v896_v50 = vadd.f32 %v895_v35, %v789_v47  ;;  %v957_v49 = vadd.f32 %v956_v42, %v892_v33  ;;  %v2371_v35 = vand.u32 4294901760, %v1049_v60  ;;  %v994_v33 = vld [vmem:[%s2587_s3 + $0x18] sm:$0xff] }
 0x131   : > { %v899_v59 = vpop.f32.mrf.mxu0  ;;  %v960_v63 = vpop.f32.mrf.mxu1 }
 0x132   : > { %v900_v13 = vadd.f32 %v899_v59, %v795_v39  ;;  %v961_v61 = vadd.f32 %v960_v63, %v896_v50 }
 0x139   : > { %v903_v3 = vpop.f32.mrf.mxu0  ;;  %v964_v31 = vpop.f32.mrf.mxu1 }
 0x13a   : > { %v904_v34 = vadd.f32 %v903_v3, %v801_v16  ;;  %v965_v54 = vadd.f32 %v964_v31, %v900_v13 }
 0x141   : > { %v907_v45 = vpop.f32.mrf.mxu0  ;;  %v968_v55 = vpop.f32.mrf.mxu1 }
 0x142   : > { %v908_v18 = vadd.f32 %v907_v45, %v807_v22  ;;  %v969_v21 = vadd.f32 %v968_v55, %v904_v34  ;;  %v2395_v45 = vsub.f32 %v1049_v60, %v2371_v35 }
 0x144   : > { %v1098_v22 = vand.u32 4294901760, %v2395_v45 }
 0x146   : > { %v1099_v39 = vsub.f32 %v2395_v45, %v1098_v22 }
 0x149   : > { %v972_v57 = vpop.f32.mrf.mxu1  ;;  %v911_v19 = vpop.f32.mrf.mxu0 }
 0x14a   : > { %v912_v26 = vadd.f32 %v911_v19, %v813_v15  ;;  %v973_v40 = vadd.f32 %v972_v57, %v908_v18  ;;  %v993_v18 = vld [vmem:[%s2587_s3 + $0x10] sm:$0xff] }
 0x151   : > { %v976_v11 = vpop.f32.mrf.mxu1  ;;  %v915_v27 = vpop.f32.mrf.mxu0 }
 0x152   : > { %v977_v51 = vadd.f32 %v976_v11, %v912_v26  ;;  %v916_v29 = vadd.f32 %v915_v27, %v819_v48  ;;  %v1100_v27 = vand.u32 4294901760, %v1099_v39 }
 0x154   : > { %1731 = vtanh.f32 %v977_v51 }
 0x155   : > { %1733 = vtanh.f32 %v973_v40  ;;  %v1055_v40 = vsel %vm1047_vm1, %v993_v18, 0 }
 0x156   : > { %1735 = vtanh.f32 %v969_v21  ;;  %v2464_v48 = vand.u32 4294901760, %v1055_v40 }
 0x157   : > { %1737 = vtanh.f32 %v965_v54 }
 0x158   : > { %1739 = vtanh.f32 %v961_v61 }
 0x159   : > { %v980_v62 = vpop.f32.mrf.mxu1 }
 0x15a   : > { %v1732_v4 = vpop.eup %1731  ;;  %v981_v36 = vadd.f32 %v980_v62, %v916_v29 }
 0x15b   : > { %v1734_v5 = vpop.eup %1733  ;;  %v2360_v53 = vand.u32 4294901760, %v1732_v4 }
 0x15c   : > { %1741 = vtanh.f32 %v981_v36  ;;  %v1736_v46 = vpop.eup %1735  ;;  %v2364_v12 = vand.u32 4294901760, %v1734_v5  ;;  %v1058_v36 = vsel %vm1047_vm1, %v994_v33, 0 }
 0x15d   : > { %1743 = vtanh.f32 %v957_v49  ;;  %v1738_v1 = vpop.eup %1737  ;;  %v2366_v23 = vand.u32 4294901760, %v1736_v46  ;;  %v2369_v30 = vsub.f32 %v1732_v4, %v2360_v53  ;;  %v1113_v49 = vsub.f32 %v1055_v40, %v2464_v48 }
 0x15e   : > { %1745 = vtanh.f32 %v2353_v28  ;;  %v1740_v8 = vpop.eup %1739  ;;  %v2376_v52 = vsub.f32 %v1734_v5, %v2364_v12  ;;  %v2378_v59 = vand.u32 4294901760, %v1738_v1  ;;  %v992_v28 = vld [vmem:[%s2587_s3 + $0x8] sm:$0xff] }
 0x15f   : > { %v2384_v2 = vsub.f32 %v1736_v46, %v2366_v23  ;;  %v2386_v3 = vand.u32 4294901760, %v1740_v8  ;;  %v1177_v37 = vand.u32 4294901760, %v2369_v30  ;;  %v1052_v55 = vsel %vm1047_vm1, %v992_v28, 0 }
 0x160   : > { %v2402_v38 = vsub.f32 %v1738_v1, %v2378_v59  ;;  %v1183_v0 = vand.u32 4294901760, %v2376_v52  ;;  %v2423_v15 = vand.u32 4294901760, %v1052_v55  ;;  %v1114_v60 = vand.u32 4294901760, %v1113_v49 }
 0x161   : > { %v2409_v6 = vsub.f32 %v1740_v8, %v2386_v3  ;;  %v1189_v14 = vand.u32 4294901760, %v2384_v2  ;;  %v1178_v41 = vsub.f32 %v2369_v30, %v1177_v37  ;;  %v2484_v1 = vand.u32 4294901760, %v1058_v36  ;;  %v995_v8 = vld [vmem:[%s2587_s3 + $0x20] sm:$0xff] }
 0x162   : > { %v1742_v42 = vpop.eup %1741  ;;  %v1184_v9 = vsub.f32 %v2376_v52, %v1183_v0  ;;  %v1195_v25 = vand.u32 4294901760, %v2402_v38  ;;  %v1105_v24 = vsub.f32 %v1052_v55, %v2423_v15 }
 0x163   : > { %v2373_v44 = vand.u32 4294901760, %v1742_v42  ;;  %v1744_v63 = vpop.eup %1743  ;;  %v1201_v10 = vand.u32 4294901760, %v2409_v6  ;;  %v1179_v34 = vand.u32 4294901760, %v1178_v41  ;;  %v1190_v11 = vsub.f32 %v2384_v2, %v1189_v14 }
 0x164   : > { %v1746_v31 = vpop.eup %1745  ;;  %v2404_v57 = vand.u32 4294901760, %v1744_v63  ;;  %v1185_v51 = vand.u32 4294901760, %v1184_v9  ;;  %v1196_v47 = vsub.f32 %v2402_v38, %v1195_v25  ;;  %v1106_v58 = vand.u32 4294901760, %v1105_v24 }
 0x165   : > { %1081 = vmatpush.msrb.mxu2 %v2373_v44  ;;  %1332 = vmatpush.msra.mxu1 %v2373_v44  ;;  %v2391_v32 = vsub.f32 %v1742_v42, %v2373_v44  ;;  %v2411_v7 = vand.u32 4294901760, %v1746_v31  ;;  %v1202_v21 = vsub.f32 %v2409_v6, %v1201_v10  ;;  %v1191_v50 = vand.u32 4294901760, %v1190_v11 }
 0x166   : > { %v2432_v16 = vsub.f32 %v1744_v63, %v2404_v57  ;;  %v1197_v54 = vand.u32 4294901760, %v1196_v47  ;;  %v1107_v4 = vsub.f32 %v1105_v24, %v1106_v58  ;;  %v1121_v42 = vsub.f32 %v1058_v36, %v2484_v1 }
 0x167   : > { %1083 = vmatpush.msrb.mxu2 %v2360_v53  ;;  %1260 = vmatpush.msra.mxu0 %v2391_v32  ;;  %v1171_v17 = vand.u32 4294901760, %v2391_v32  ;;  %v2440_v26 = vsub.f32 %v1746_v31, %v2411_v7  ;;  %v1203_v29 = vand.u32 4294901760, %v1202_v21  ;;  %v1020_v21 = vpop.permute.xlu1 %1019 }
 0x168   : > { %1334 = vmatpush.msra.mxu1 %v2360_v53  ;;  %v1207_v43 = vand.u32 4294901760, %v2432_v16  ;;  %v1108_v46 = vand.u32 4294901760, %v1107_v4  ;;  %v1122_v63 = vand.u32 4294901760, %v1121_v42 }
 0x169   : > { %1085 = vmatpush.msrb.mxu2 %v2364_v12  ;;  %1263 = vmatpush.msra.mxu0 %v2369_v30  ;;  %v1172_v19 = vsub.f32 %v2391_v32, %v1171_v17  ;;  %v1213_v13 = vand.u32 4294901760, %v2440_v26  ;;  %v1115_v30 = vsub.f32 %v1113_v49, %v1114_v60 }
 0x16a   : > { %1336 = vmatpush.msra.mxu1 %v2364_v12  ;;  %v1208_v61 = vsub.f32 %v2432_v16, %v1207_v43 }
 0x16b   : > { %1087 = vmatpush.msrb.mxu2 %v2366_v23  ;;  %1266 = vmatpush.msra.mxu0 %v2376_v52  ;;  %v1173_v20 = vand.u32 4294901760, %v1172_v19  ;;  %v1214_v62 = vsub.f32 %v2440_v26, %v1213_v13  ;;  %v1061_v52 = vsel %vm1047_vm1, %v995_v8, 0  ;;  %v1116_v28 = vand.u32 4294901760, %v1115_v30 }
 0x16c   : > { %1338 = vmatpush.msra.mxu1 %v2366_v23  ;;  %v1209_v56 = vand.u32 4294901760, %v1208_v61 }
 0x16d   : > { %1089 = vmatpush.msrb.mxu2 %v2378_v59  ;;  %1174 = vmatpush.msrb.mxu3 %v1173_v20  ;;  %v1215_v5 = vand.u32 4294901760, %v1214_v62 }
 0x16e   : > { %1269 = vmatpush.msra.mxu0 %v2384_v2  ;;  %1340 = vmatpush.msra.mxu1 %v2378_v59  ;;  %v996_v2 = vld [vmem:[%s2587_s3 + $0x28] sm:$0xff] }
 0x16f   : > { %1091 = vmatpush.msrb.mxu2 %v2386_v3  ;;  %1180 = vmatpush.msrb.mxu3 %v1179_v34  ;;  %v1064_v31 = vsel %vm1047_vm1, %v996_v2, 0 }
 0x170   : > { %1272 = vmatpush.msra.mxu0 %v2402_v38  ;;  %1342 = vmatpush.msra.mxu1 %v2386_v3 }
 0x171   : > { %1093 = vmatpush.msrb.mxu2 %v2404_v57  ;;  %1186 = vmatpush.msrb.mxu3 %v1185_v51 }
 0x172   : > { %1275 = vmatpush.msra.mxu0 %v2409_v6  ;;  %1344 = vmatpush.msra.mxu1 %v2404_v57 }
 0x173   : > { %1095 = vmatpush.msrb.mxu2 %v2411_v7  ;;  %1192 = vmatpush.msrb.mxu3 %v1191_v50 }
 0x174   : > { %1278 = vmatpush.msra.mxu0 %v2432_v16  ;;  %1346 = vmatpush.msra.mxu1 %v2411_v7 }
 0x175   : > { %1101 = vmatmul.f32.vlgmr.msrb.gmra.mxu2 %v1100_v27  ;;  %1198 = vmatpush.msrb.mxu3 %v1197_v54 }
 0x176   : > { %1407 = vmatpush.msra.mxu2 %v1171_v17  ;;  %1281 = vmatpush.msra.mxu0 %v2440_v26 }
 0x177   : > { %1204 = vmatpush.msrb.mxu3 %v1203_v29  ;;  %1284 = vmatmul.f32.vlgmr.msra.gmra.mxu0 %v2395_v45 }
 0x178   : > { %1411 = vmatpush.msra.mxu2 %v1177_v37  ;;  %1350 = vmatmul.f32.vlgmr.msra.gmra.mxu1 %v1098_v22  ;;  %v1136_v37 = vand.u32 4294901760, %v1064_v31 }
 0x179   : > { %1210 = vmatpush.msrb.mxu3 %v1209_v56 }
 0x17a   : > { %1415 = vmatpush.msra.mxu2 %v1183_v0  ;;  %v1137_v55 = vsub.f32 %v1064_v31, %v1136_v37  ;;  %v998_v0 = vld [vmem:[%s2587_s3 + $0x38] sm:$0xff] }
 0x17b   : > { %1216 = vmatpush.msrb.mxu3 %v1215_v5  ;;  %v1035_v5 = vpop.permute.xlu1 %1034 }
 0x17c   : > { %1419 = vmatpush.msra.mxu2 %v1189_v14  ;;  %1218 = vmatmul.f32.vlgmr.msrb.gmra.mxu3 %v2371_v35  ;;  %v1138_v38 = vand.u32 4294901760, %v1137_v55  ;;  %v1070_v14 = vsel %vm1047_vm1, %v998_v0, 0 }
 0x17d   : > { %1109 = vmatmul.f32.gmra.mxu2 %v1108_v46  ;;  %1478 = vmatpush.msra.mxu3 %v2373_v44  ;;  %v2503_v44 = vand.u32 4294901760, %v1061_v52  ;;  %v1152_v22 = vand.u32 4294901760, %v1070_v14 }
 0x17e   : > { %1423 = vmatpush.msra.mxu2 %v1195_v25  ;;  %v1139_v6 = vsub.f32 %v1137_v55, %v1138_v38 }
 0x17f   : > { %1480 = vmatpush.msra.mxu3 %v2360_v53  ;;  %1289 = vmatmul.f32.gmra.mxu0 %v1105_v24  ;;  %v1123_v53 = vsub.f32 %v1121_v42, %v1122_v63  ;;  %v1153_v9 = vsub.f32 %v1070_v14, %v1152_v22  ;;  %v1015_v24 = vpop.permute.xlu0 %1014 }
 0x180   : > { %1427 = vmatpush.msra.mxu2 %v1201_v10  ;;  %1356 = vmatmul.f32.gmra.mxu1 %v1106_v58  ;;  %v1140_v19 = vand.u32 4294901760, %v1139_v6 }
 0x181   : > { %1482 = vmatpush.msra.mxu3 %v2364_v12  ;;  %v1129_v12 = vsub.f32 %v1061_v52, %v2503_v44  ;;  %v1154_v25 = vand.u32 4294901760, %v1153_v9 }
 0x182   : > { %1431 = vmatpush.msra.mxu2 %v1207_v43 }
 0x183   : > { %1484 = vmatpush.msra.mxu3 %v2366_v23  ;;  %v1124_v23 = vand.u32 4294901760, %v1123_v53  ;;  %v1130_v32 = vand.u32 4294901760, %v1129_v12  ;;  %v1155_v18 = vsub.f32 %v1153_v9, %v1154_v25 }
 0x184   : > { %1435 = vmatpush.msra.mxu2 %v1213_v13  ;;  %1222 = vmatmul.f32.gmra.mxu3 %v2423_v15 }
 0x185   : > { %1117 = vmatmul.f32.gmra.mxu2 %v1116_v28  ;;  %1486 = vmatpush.msra.mxu3 %v2378_v59  ;;  %v997_v59 = vld [vmem:[%s2587_s3 + $0x30] sm:$0xff]  ;;  %v1131_v45 = vsub.f32 %v1129_v12, %v1130_v32  ;;  %v1156_v26 = vand.u32 4294901760, %v1155_v18 }
 0x187   : > { %1488 = vmatpush.msra.mxu3 %v2386_v3  ;;  %1294 = vmatmul.f32.gmra.mxu0 %v1113_v49  ;;  %v1067_v3 = vsel %vm1047_vm1, %v997_v59, 0  ;;  %v1132_v17 = vand.u32 4294901760, %v1131_v45  ;;  %v1030_v62 = vpop.permute.xlu0 %1029 }
 0x188   : > { %1362 = vmatmul.f32.gmra.mxu1 %v1114_v60 }
 0x189   : > { %1490 = vmatpush.msra.mxu3 %v2404_v57  ;;  %v1144_v57 = vand.u32 4294901760, %v1067_v3 }
 0x18b   : > { %1492 = vmatpush.msra.mxu3 %v2411_v7  ;;  %v1145_v7 = vsub.f32 %v1067_v3, %v1144_v57 }
 0x18c   : > { %1226 = vmatmul.f32.gmra.mxu3 %v2464_v48 }
 0x18d   : > { %1125 = vmatmul.f32.gmra.mxu2 %v1124_v23  ;;  %v1146_v41 = vand.u32 4294901760, %v1145_v7 }
 0x18f   : > { %1299 = vmatmul.f32.gmra.mxu0 %v1121_v42  ;;  %v1147_v20 = vsub.f32 %v1145_v7, %v1146_v41 }
 0x190   : > { %1368 = vmatmul.f32.gmra.mxu1 %v1122_v63 }
 0x191   : > { %v1148_v16 = vand.u32 4294901760, %v1147_v20 }
 0x194   : > { %1230 = vmatmul.f32.gmra.mxu3 %v2484_v1 }
 0x195   : > { %1133 = vmatmul.f32.gmra.mxu2 %v1132_v17 }
 0x197   : > { %1304 = vmatmul.f32.gmra.mxu0 %v1129_v12 }
 0x198   : > { %1374 = vmatmul.f32.gmra.mxu1 %v1130_v32 }
 0x19c   : > { %1234 = vmatmul.f32.gmra.mxu3 %v2503_v44 }
 0x19d   : > { %1141 = vmatmul.f32.gmra.mxu2 %v1140_v19 }
 0x19f   : > { %1309 = vmatmul.f32.gmra.mxu0 %v1137_v55 }
 0x1a0   : > { %1380 = vmatmul.f32.gmra.mxu1 %v1138_v38 }
 0x1a4   : > { %1238 = vmatmul.f32.gmra.mxu3 %v1136_v37 }
 0x1a5   : > { %1149 = vmatmul.f32.gmra.mxu2 %v1148_v16  ;;  %v1546_v16 = vpop.permute.xlu1 %1545 }
 0x1a7   : > { %1314 = vmatmul.f32.gmra.mxu0 %v1145_v7 }
 0x1a8   : > { %1386 = vmatmul.f32.gmra.mxu1 %v1146_v41 }
 0x1ac   : > { %1242 = vmatmul.f32.gmra.mxu3 %v1144_v57 }
 0x1ad   : > { %1157 = vmatmul.f32.gmra.mxu2 %v1156_v26 }
 0x1af   : > { %1319 = vmatmul.f32.gmra.mxu0 %v1153_v9  ;;  %v1045_v9 = vpop.permute.xlu0 %1044 }
 0x1b0   : > { %1392 = vmatmul.f32.gmra.mxu1 %v1154_v25 }
 0x1b4   : > { %1246 = vmatmul.f32.gmra.mxu3 %v1152_v22 }
 0x1b5   : > { %1437 = vmatmul.f32.vlgmr.msra.gmra.mxu2 %v2371_v35 }
 0x1bc   : > { %1494 = vmatmul.f32.vlgmr.msra.gmra.mxu3 %v2371_v35 }
 0x1bd   : > { %1441 = vmatmul.f32.gmra.mxu2 %v2423_v15 }
 0x1c4   : > { %1498 = vmatmul.f32.gmra.mxu3 %v2423_v15  ;;  %v1010_v15 = vpop.permute.xlu2 %1009 }
 0x1c5   : > { %1445 = vmatmul.f32.gmra.mxu2 %v2464_v48 }
 0x1cc   : > { %1502 = vmatmul.f32.gmra.mxu3 %v2464_v48  ;;  %v1025_v48 = vpop.permute.xlu2 %1024 }
 0x1cd   : > { %1449 = vmatmul.f32.gmra.mxu2 %v2484_v1 }
 0x1d4   : > { %1506 = vmatmul.f32.gmra.mxu3 %v2484_v1 }
 0x1d5   : > { %1453 = vmatmul.f32.gmra.mxu2 %v2503_v44 }
 0x1dc   : > { %1510 = vmatmul.f32.gmra.mxu3 %v2503_v44 }
 0x1dd   : > { %1457 = vmatmul.f32.gmra.mxu2 %v1136_v37 }
 0x1e4   : > { %1514 = vmatmul.f32.gmra.mxu3 %v1136_v37 }
 0x1e5   : > { %1461 = vmatmul.f32.gmra.mxu2 %v1144_v57 }
 0x1ec   : > { %1518 = vmatmul.f32.gmra.mxu3 %v1144_v57  ;;  %v1040_v57 = vpop.permute.xlu2 %1039 }
 0x1ed   : > { %1465 = vmatmul.f32.gmra.mxu2 %v1152_v22 }
 0x1f4   : > { %1522 = vmatmul.f32.gmra.mxu3 %v1152_v22  ;;  %v1285_v60 = vpop.f32.mrf.mxu0 }
 0x1f5   : > { %v1351_v42 = vpop.f32.mrf.mxu1 }
 0x1f8   : > { %v1102_v35 = vpop.f32.mrf.mxu2 }
 0x1f9   : > { %v1103_v10 = vadd.f32 %v1102_v35, %v1010_v15  ;;  %v1551_v15 = vpop.permute.xlu2 %1550 }
 0x1fc   : > { %v1290_v63 = vpop.f32.mrf.mxu0 }
 0x1fd   : > { %v1357_v44 = vpop.f32.mrf.mxu1 }
 0x1ff   : > { %v1219_v34 = vpop.f32.mrf.mxu3 }
 0x200   : > { %v1110_v11 = vpop.f32.mrf.mxu2  ;;  %v1220_v39 = vadd.f32 %v1219_v34, %v1103_v10 }
 0x201   : > { %v1111_v40 = vadd.f32 %v1110_v11, %v1015_v24 }
 0x202   : > { %v1286_v31 = vadd.f32 %v1285_v60, %v1220_v39 }
 0x204   : > { %v1295_v12 = vpop.f32.mrf.mxu0  ;;  %v1352_v37 = vadd.f32 %v1351_v42, %v1286_v31 }
 0x205   : > { %v1363_v23 = vpop.f32.mrf.mxu1 }
 0x207   : > { %v1223_v51 = vpop.f32.mrf.mxu3 }
 0x208   : > { %v1118_v47 = vpop.f32.mrf.mxu2  ;;  %v1224_v43 = vadd.f32 %v1223_v51, %v1111_v40 }
 0x209   : > { %v1119_v13 = vadd.f32 %v1118_v47, %v1020_v21 }
 0x20a   : > { %v1291_v59 = vadd.f32 %v1290_v63, %v1224_v43 }
 0x20c   : > { %v1358_v3 = vadd.f32 %v1357_v44, %v1291_v59  ;;  %v1300_v38 = vpop.f32.mrf.mxu0  ;;  %v1566_v59 = vpop.permute.xlu2 %1565 }
 0x20d   : > { %v1369_v41 = vpop.f32.mrf.mxu1 }
 0x20f   : > { %v1227_v50 = vpop.f32.mrf.mxu3 }
 0x210   : > { %v1126_v27 = vpop.f32.mrf.mxu2  ;;  %v1228_v58 = vadd.f32 %v1227_v50, %v1119_v13  ;;  %v1556_v50 = vpop.permute.xlu0 %1555 }
 0x211   : > { %v1127_v54 = vadd.f32 %v1126_v27, %v1025_v48 }
 0x212   : > { %v1296_v7 = vadd.f32 %v1295_v12, %v1228_v58 }
 0x214   : > { %v1364_v22 = vadd.f32 %v1363_v23, %v1296_v7  ;;  %v1305_v18 = vpop.f32.mrf.mxu0 }
 0x215   : > { %v1375_v40 = vpop.f32.mrf.mxu1 }
 0x217   : > { %v1231_v61 = vpop.f32.mrf.mxu3 }
 0x218   : > { %v1134_v33 = vpop.f32.mrf.mxu2  ;;  %v1232_v29 = vadd.f32 %v1231_v61, %v1127_v54 }
 0x219   : > { %v1135_v4 = vadd.f32 %v1134_v33, %v1030_v62 }
 0x21a   : > { %v1301_v10 = vadd.f32 %v1300_v38, %v1232_v29 }
 0x21c   : > { %v1370_v47 = vadd.f32 %v1369_v41, %v1301_v10  ;;  %v1310_v54 = vpop.f32.mrf.mxu0 }
 0x21d   : > { %v1381_v62 = vpop.f32.mrf.mxu1 }
 0x21f   : > { %v1235_v49 = vpop.f32.mrf.mxu3 }
 0x220   : > { %v1142_v36 = vpop.f32.mrf.mxu2  ;;  %v1236_v56 = vadd.f32 %v1235_v49, %v1135_v4 }
 0x221   : > { %v1143_v46 = vadd.f32 %v1142_v36, %v1035_v5  ;;  %v1561_v5 = vpop.permute.xlu1 %1560 }
 0x222   : > { %v1306_v27 = vadd.f32 %v1305_v18, %v1236_v56 }
 0x224   : > { %v1376_v29 = vadd.f32 %v1375_v40, %v1306_v27  ;;  %v1315_v56 = vpop.f32.mrf.mxu0 }
 0x225   : > { %v1387_v23 = vpop.f32.mrf.mxu1 }
 0x227   : > { %v1239_v1 = vpop.f32.mrf.mxu3 }
 0x228   : > { %v2537_v8 = vpop.f32.mrf.mxu2  ;;  %v2539_v30 = vadd.f32 %v1239_v1, %v1143_v46 }
 0x229   : > { %v1151_v63 = vadd.f32 %v2537_v8, %v1040_v57 }
 0x22a   : > { %v1311_v46 = vadd.f32 %v1310_v54, %v2539_v30 }
 0x22f   : > { %v2541_v52 = vpop.f32.mrf.mxu3 }
 0x230   : > { %v2543_v28 = vpop.f32.mrf.mxu2  ;;  %v1244_v12 = vadd.f32 %v2541_v52, %v1151_v63 }
 0x237   : > { %v2545_v2 = vpop.f32.mrf.mxu3 }
 0x238   : > { %v1438_v53 = vpop.f32.mrf.mxu2 }
 0x239   : > { %v1439_v55 = vadd.f32 %v1438_v53, %v1352_v37  ;;  %v1382_v53 = vadd.f32 %v1381_v62, %v1311_v46 }
 0x23f   : > { %v1495_v32 = vpop.f32.mrf.mxu3 }
 0x240   : > { %v1442_v45 = vpop.f32.mrf.mxu2  ;;  %v1496_v17 = vadd.f32 %v1495_v32, %v1439_v55 }
 0x241   : > { %v1443_v0 = vadd.f32 %v1442_v45, %v1358_v3  ;;  %v1316_v45 = vadd.f32 %v1315_v56, %v1244_v12 }
 0x242   : > { %1747 = vtanh.f32 %v1496_v17  ;;  %v1159_v17 = vadd.f32 %v2543_v28, %v1045_v9 }
 0x243   : > { %v1388_v8 = vadd.f32 %v1387_v23, %v1316_v45 }
 0x244   : > { %v1248_v57 = vadd.f32 %v2545_v2, %v1159_v17  ;;  %v1576_v2 = vpop.permute.xlu1 %1575 }
 0x247   : > { %v1499_v6 = vpop.f32.mrf.mxu3 }
 0x248   : > { %v1446_v14 = vpop.f32.mrf.mxu2  ;;  %v1500_v19 = vadd.f32 %v1499_v6, %v1443_v0  ;;  %v1748_v20 = vpop.eup %1747 }
 0x249   : > { %v1447_v25 = vadd.f32 %v1446_v14, %v1364_v22  ;;  %v1583_v39 = vmul.f32 %v1748_v20, %v1546_v16  ;;  %v1320_v0 = vpop.f32.mrf.mxu0  ;;  %v1571_v14 = vpop.permute.xlu0 %1570 }
 0x24a   : > { %1749 = vtanh.f32 %v1500_v19  ;;  %v1321_v19 = vadd.f32 %v1320_v0, %v1248_v57  ;;  %v1393_v22 = vpop.f32.mrf.mxu1 }
 0x24c   : > { %v1394_v18 = vadd.f32 %v1393_v22, %v1321_v19 }
 0x24f   : > { %v1503_v26 = vpop.f32.mrf.mxu3 }
 0x250   : > { %v1750_v35 = vpop.eup %1749  ;;  %v1450_v34 = vpop.f32.mrf.mxu2  ;;  %v1504_v11 = vadd.f32 %v1503_v26, %v1447_v25 }
 0x251   : > { %v1584_v24 = vmul.f32 %v1750_v35, %v1551_v15  ;;  %v1451_v43 = vadd.f32 %v1450_v34, %v1370_v47  ;;  %v1581_v34 = vpop.permute.xlu2 %1580 }
 0x252   : > { %1751 = vtanh.f32 %v1504_v11 }
 0x253   : > { %v1591_v51 = vadd.f32 %v1584_v24, %v1583_v39 }
 0x257   : > { %v1507_v21 = vpop.f32.mrf.mxu3 }
 0x258   : > { %v1752_v13 = vpop.eup %1751  ;;  %v1454_v58 = vpop.f32.mrf.mxu2  ;;  %v1508_v48 = vadd.f32 %v1507_v21, %v1451_v43 }
 0x259   : > { %v1585_v61 = vmul.f32 %v1752_v13, %v1556_v50  ;;  %v1455_v4 = vadd.f32 %v1454_v58, %v1376_v29  ;;  %v1607_v21 = vpop.permute.xlu0 %1606 }
 0x25a   : > { %1753 = vtanh.f32 %v1508_v48  ;;  %v1609_v50 = vperm.slane %v1607_v21, 0 }
 0x25b   : > { %v1592_v33 = vadd.f32 %v1591_v51, %v1585_v61 }
 0x25f   : > { %v1511_v49 = vpop.f32.mrf.mxu3 }
 0x260   : > { %v1754_v36 = vpop.eup %1753  ;;  %v1458_v60 = vpop.f32.mrf.mxu2  ;;  %v1512_v1 = vadd.f32 %v1511_v49, %v1455_v4 }
 0x261   : > { %v1586_v42 = vmul.f32 %v1754_v36, %v1561_v5  ;;  %v1459_v31 = vadd.f32 %v1458_v60, %v1382_v53 }
 0x262   : > { %1755 = vtanh.f32 %v1512_v1 }
 0x263   : > { %v1593_v44 = vadd.f32 %v1592_v33, %v1586_v42 }
 0x267   : > { %v1515_v32 = vpop.f32.mrf.mxu3 }
 0x268   : > { %v1756_v37 = vpop.eup %1755  ;;  %v1516_v55 = vadd.f32 %v1515_v32, %v1459_v31  ;;  %v1462_v30 = vpop.f32.mrf.mxu2 }
 0x269   : > { %v1587_v3 = vmul.f32 %v1756_v37, %v1566_v59  ;;  %v1463_v6 = vadd.f32 %v1462_v30, %v1388_v8 }
 0x26a   : > { %1757 = vtanh.f32 %v1516_v55 }
 0x26b   : > { %v1594_v38 = vadd.f32 %v1593_v44, %v1587_v3 }
 0x26f   : > { %v1519_v7 = vpop.f32.mrf.mxu3 }
 0x270   : > { %v1758_v52 = vpop.eup %1757  ;;  %v1520_v41 = vadd.f32 %v1519_v7, %v1463_v6  ;;  %v1466_v25 = vpop.f32.mrf.mxu2 }
 0x271   : > { %v1588_v20 = vmul.f32 %v1758_v52, %v1571_v14  ;;  %v1467_v28 = vadd.f32 %v1466_v25, %v1394_v18 }
 0x272   : > { %1759 = vtanh.f32 %v1520_v41 }
 0x273   : > { %v1595_v16 = vadd.f32 %v1594_v38, %v1588_v20 }
 0x277   : > { %v1523_v9 = vpop.f32.mrf.mxu3 }
 0x278   : > { %v1524_v26 = vadd.f32 %v1523_v9, %v1467_v28  ;;  %v1760_v35 = vpop.eup %1759 }
 0x279   : > { %v1589_v15 = vmul.f32 %v1760_v35, %v1576_v2 }
 0x27a   : > { %1761 = vtanh.f32 %v1524_v26 }
 0x27b   : > { %v1596_v11 = vadd.f32 %v1595_v16, %v1589_v15 }
 0x280   : > { %v1762_v10 = vpop.eup %1761 }
 0x281   : > { %v1590_v39 = vmul.f32 %v1762_v10, %v1581_v34 }
 0x283   : > { %v1597_v24 = vadd.f32 %v1596_v11, %v1590_v39 }
 0x285   : > { %v1598_v40 = vrot.slane %v1597_v24, 4 }
 0x287   : > { %v1599_v51 = vadd.f32 %v1598_v40, %v1597_v24 }
 0x289   : > { %v1600_v47 = vrot.slane %v1599_v51, 2 }
 0x28b   : > { %v1601_v43 = vadd.f32 %v1600_v47, %v1599_v51 }
 0x28d   : > { %v1602_v13 = vrot.slane %v1601_v43, 1 }
 0x28f   : > { %v1603_v27 = vadd.f32 %v1602_v13, %v1601_v43 }
 0x291   : > { %v1610_v58 = vadd.f32 %v1609_v50, %v1603_v27 }
 0x293   : > { %1611 = vst [vmem:[%s273_s10] sm:$0x1] %v1610_v58 }
 0x294   : > { %1790 = shalt.err (!%p1787_p3)
}
 0x295   : > { %1688 = dma.vmem_to_hbm [thread:$0]  (%p1909_p5), %s1624_s14, 16, %s1626_s15, %s1613_s16  }
 0x296 PF: > { %p1694_p4 = scmp.ge.s32.totalorder %s1825_s29, 2  ;;  %s1637_s23 = sand.u32 1, %s1813_s26  }
 0x297   : > { %s1638_s24 = scalar_lea.sflag [#allocation4], %s1637_s23 }
 0x298   : > { %p1691_p7 = pnand %p1694_p4, %p1913_p6 }
 0x29a   : > { %p1692_p8 = pneg %p1691_p7 }
 0x29c   : > { %1808 = dma.done.wait (%p1692_p8), %s1638_s24, 16  }
 0x29d   : > { %1810 = vsyncadd (%p1692_p8), %s1638_s24, 4294967280  ;;  %p19_p9 = scmp.ge.s32.totalorder %s1896_s8, 4   ;;  %s2596_s26 = smov %s1817_s27 }
 0x29e   : > { %s2597_s27 = smov %s1821_s28  ;;  %s2598_s28 = smov %s1907_s11 }
 0x29f   : > { %s2599_s29 = smov %s1896_s8  ;;  %21 = sbr.rel (!%p19_p9) target bundleno = 6 (0x6), region = 83 }
 0x2a4   :  { %1643 = vsyncpa [#allocation4], 1 }
 0x2a5   :  { %1645 = vsyncpa [#allocation4 + $0x1], 1 }

</bundles_post_ra>
